<compile_context>
chip_gen: v6e
topology: v6e:2x2x1
jax: 0.10.0
libtpu: 0.0.40
codegen_flags: <defaults>
</compile_context>

<pallas_src>
import functools

import jax
import jax.numpy as jnp
from jax.experimental import pallas as pl
from jax.experimental.pallas import tpu as pltpu

EPS = 1e-6  # matches torch.nn.functional.pairwise_distance default

_SUBLANE = 8
_LANE = 128


def _tpu_generation():
    """Best-effort TPU generation from device_kind; 0 if unknown."""
    try:
        kind = jax.devices()[0].device_kind.lower()
    except Exception:
        return 0
    if "trillium" in kind:
        return 6
    if "7x" in kind or "v7" in kind:
        return 7
    for g in (6, 5, 4, 3):
        if ("v%d" % g) in kind:
            return g
    return 0


def _vmem_plan(gen):
    """(input-buffer budget bytes, vmem_limit_bytes or None) per TPU generation."""
    if gen >= 7:              # v7x: 64 MiB physical / 32 MiB default scoped per TC
        return 24 << 20, 48 << 20
    if gen == 6:              # v6e: 128 MiB physical / 32 MiB default scoped
        return 40 << 20, 96 << 20
    if gen == 5:              # v5e/v5p: 128 MiB physical / 16 MiB default scoped
        return 12 << 20, 64 << 20
    return 8 << 20, None      # unknown/older: stay inside the default scoped limit


def _choose_tiles(batch, feat, itemsize, buf_budget, max_rows, max_cols):
    """Pick (block_rows, block_cols) honoring (8,128) constraints and the VMEM budget."""
    # D tile: full D when it fits, else a lane-aligned chunk (large-D path).
    if feat <= max_cols:
        td = feat
    else:
        td = max(_LANE, (max_cols // _LANE) * _LANE)

    # Per-row footprint of one tile: 2 inputs x 2 pipeline buffers in the native
    # dtype + ~3 f32 intermediates (cast / diff / diff^2) Mosaic may materialize.
    bytes_per_row = td * (4 * itemsize + 3 * 4)
    tb = int(buf_budget // max(1, bytes_per_row))
    tb = min(tb, int(max_rows))
    tb = max(_SUBLANE, (tb // _SUBLANE) * _SUBLANE)
    if tb >= batch:
        tb = batch            # full-dim block is always legal

    # Force >= 4 pipeline steps on non-trivial problems so input DMA overlaps compute.
    n_d = pl.cdiv(feat, td)
    total_bytes = 2 * batch * feat * itemsize
    if total_bytes > (4 << 20):
        while tb > _SUBLANE and pl.cdiv(batch, tb) * n_d < 4:
            tb = max(_SUBLANE, ((tb // 2) // _SUBLANE) * _SUBLANE)
    return tb, td


def _contrastive_loss_kernel(x1_ref, x2_ref, label_ref, out_ref, *,
                             margin, feat_dim, block_cols, native_sub, mask_cols):
    """Grid = (row_tiles, d_chunks); out_ref is the (tb,1) per-row loss block,
    used as the squared-distance accumulator across the (arbitrary) D axis."""
    j = pl.program_id(1)

    @pl.when(j == 0)
    def _init():
        out_ref[...] = jnp.zeros_like(out_ref)

    x1 = x1_ref[...]
    x2 = x2_ref[...]
    if native_sub:
        # One narrow subtract + one widening cast (v6e/v7x, sub-f32 inputs).
        diff = (x1 - x2).astype(jnp.float32) + EPS
    else:
        # f32-first path (f32 inputs, or v5e where the VPU has no bf16).
        diff = x1.astype(jnp.float32) - x2.astype(jnp.float32) + EPS
    sq = diff * diff

    if mask_cols:
        # Ragged last D-chunk: zero out-of-range columns before reducing.
        col = j * block_cols + jax.lax.broadcasted_iota(jnp.int32, sq.shape, 1)
        sq = jnp.where(col < feat_dim, sq, 0.0)

    # Route the D-axis reduction through the otherwise-idle MXU.
    ones = jnp.ones((sq.shape[1], 1), jnp.float32)
    out_ref[...] += jnp.dot(sq, ones, preferred_element_type=jnp.float32)

    @pl.when(j == pl.num_programs(1) - 1)
    def _finalize():
        sq_dist = out_ref[...]                       # (tb, 1) accumulated ||diff||^2
        dist = jnp.sqrt(sq_dist)
        lab = label_ref[...].astype(jnp.float32)     # (tb, 1)
        hinge = jnp.maximum(margin - dist, 0.0)
        out_ref[...] = (1.0 - lab) * sq_dist + lab * hinge * hinge


def contrastive_loss(output1, output2, label, *, margin=2.0,
                     block_rows=None, block_cols=None):
    """output1, output2: (B, D) features; label: (B,) or (B, 1). Returns scalar f32 loss."""
    B, D = output1.shape
    label2d = jnp.reshape(label, (B, 1)).astype(jnp.float32)

    itemsize = max(jnp.dtype(output1.dtype).itemsize,
                   jnp.dtype(output2.dtype).itemsize)
    gen = _tpu_generation()
    buf_budget, vmem_limit = _vmem_plan(gen)

    max_rows = block_rows if block_rows is not None else 1024
    max_cols = block_cols if block_cols is not None else 2048
    tb, td = _choose_tiles(B, D, itemsize, buf_budget, max_rows, max_cols)

    n_row = pl.cdiv(B, tb)
    n_col = pl.cdiv(D, td)
    mask_cols = (D % td) != 0
    # Native-dtype subtract only for sub-f32 inputs on generations with a bf16 VPU.
    native_sub = (jnp.dtype(output1.dtype) == jnp.dtype(output2.dtype)
                  and jnp.dtype(output1.dtype).itemsize < 4
                  and gen >= 6)

    kernel = functools.partial(
        _contrastive_loss_kernel, margin=float(margin), feat_dim=D,
        block_cols=td, native_sub=native_sub, mask_cols=mask_cols)

    compiler_kwargs = dict(dimension_semantics=("parallel", "arbitrary"))
    if vmem_limit is not None:
        compiler_kwargs["vmem_limit_bytes"] = int(vmem_limit)

    per_row = pl.pallas_call(
        kernel,
        out_shape=jax.ShapeDtypeStruct((B, 1), jnp.float32),
        grid=(n_row, n_col),
        in_specs=[
            pl.BlockSpec((tb, td), lambda i, j: (i, j)),
            pl.BlockSpec((tb, td), lambda i, j: (i, j)),
            pl.BlockSpec((tb, 1), lambda i, j: (i, 0)),
        ],
        out_specs=pl.BlockSpec((tb, 1), lambda i, j: (i, 0)),
        compiler_params=pltpu.CompilerParams(**compiler_kwargs),
    )(output1, output2, label2d)

    # Tiny (B,) reduction: cheaper in XLA than serializing the whole grid onto one
    # TensorCore with a resident scalar accumulator.
    return jnp.sum(per_row) / jnp.float32(B)


def _reference_loss(output1, output2, label, margin=2.0):
    diff = output1.astype(jnp.float32) - output2.astype(jnp.float32) + EPS
    d = jnp.sqrt(jnp.sum(diff * diff, axis=1))
    lab = label.astype(jnp.float32)
    return jnp.mean((1.0 - lab) * d * d +
                    lab * jnp.square(jnp.maximum(margin - d, 0.0)))


if __name__ == "__main__":
    key = jax.random.PRNGKey(0)
    k1, k2, k3, k4, k5, k6, k7, k8, k9 = jax.random.split(key, 9)

    # 1) Small primary case (single tile on both axes).
    B, D = 8, 32
    out1 = jax.random.normal(k1, (B, D), dtype=jnp.float32)
    out2 = jax.random.normal(k2, (B, D), dtype=jnp.float32)
    lab = jax.random.bernoulli(k3, 0.5, (B,)).astype(jnp.float32)

    loss = contrastive_loss(out1, out2, lab)
    jax.block_until_ready(loss)
    ref = _reference_loss(out1, out2, lab)
    assert jnp.allclose(loss, ref, rtol=1e-5, atol=1e-5), (loss, ref)

    # 2) Multi-tile on BOTH axes with ragged tails (exercises row-tile pipelining,
    #    D-chunk accumulation in out_ref, and column masking).
    B2, D2 = 200, 200
    o1 = jax.random.normal(k4, (B2, D2), dtype=jnp.float32)
    o2 = jax.random.normal(k5, (B2, D2), dtype=jnp.float32)
    lab2 = jax.random.bernoulli(k6, 0.5, (B2,)).astype(jnp.float32)

    loss2 = contrastive_loss(o1, o2, lab2, block_rows=64, block_cols=128)
    jax.block_until_ready(loss2)
    ref2 = _reference_loss(o1, o2, lab2)
    assert jnp.allclose(loss2, ref2, rtol=1e-4, atol=1e-5), (loss2, ref2)

    # 3) bf16 inputs (exercises the native-dtype subtract path on v6e/v7x).
    B3, D3 = 16, 256
    o1b = jax.random.normal(k7, (B3, D3), dtype=jnp.bfloat16)
    o2b = jax.random.normal(k8, (B3, D3), dtype=jnp.bfloat16)
    lab3 = jax.random.bernoulli(k9, 0.5, (B3,)).astype(jnp.float32)

    loss3 = contrastive_loss(o1b, o2b, lab3)
    jax.block_until_ready(loss3)
    ref3 = _reference_loss(o1b, o2b, lab3)
    assert jnp.allclose(loss3, ref3, rtol=3e-2, atol=3e-2), (loss3, ref3)

    print("KERNEL_OK")
</pallas_src>

<mosaic_0001>
module attributes {stable_mosaic.version = 11 : i64} {
  func.func @_contrastive_loss_kernel(%arg0: i32, %arg1: i32, %arg2: memref<8x32xf32, #tpu.memory_space<vmem>>, %arg3: memref<8x32xf32, #tpu.memory_space<vmem>>, %arg4: memref<8x1xf32, #tpu.memory_space<vmem>>, %arg5: memref<8x1xf32, #tpu.memory_space<vmem>>) attributes {dimension_semantics = [#tpu.dimension_semantics<parallel>, #tpu.dimension_semantics<arbitrary>], iteration_bounds = array<i64: 1, 1>, scalar_prefetch = 0 : i64, scratch_operands = 0 : i64, tpu.core_type = #tpu.core_type<tc>, window_params = [{transform_indices = @transform_0, window_bounds = array<i64: 8, 32>}, {transform_indices = @transform_1, window_bounds = array<i64: 8, 32>}, {transform_indices = @transform_2, window_bounds = array<i64: 8, 1>}, {transform_indices = @transform_3, window_bounds = array<i64: 8, 1>}]} {
    %c0_i32 = arith.constant 0 : i32
    %0 = arith.cmpi eq, %arg1, %c0_i32 : i32
    %1 = arith.extui %0 : i1 to i32
    %c0_i32_0 = arith.constant 0 : i32
    %2 = arith.cmpi ne, %1, %c0_i32_0 : i32
    scf.if %2 {
      %cst_12 = arith.constant 0.000000e+00 : f32
      %17 = vector.broadcast %cst_12 : f32 to vector<8x1xf32>
      %c0_13 = arith.constant 0 : index
      %c0_14 = arith.constant 0 : index
      %18 = vector.load %arg5[%c0_13, %c0_14] : memref<8x1xf32, #tpu.memory_space<vmem>>, vector<8x1xf32>
      tpu.vector_store %arg5[%c0_13, %c0_14], %17 {strides = array<i32>} : memref<8x1xf32, #tpu.memory_space<vmem>>, vector<8x1xf32>,
    } else {
    }
    %c0 = arith.constant 0 : index
    %c0_1 = arith.constant 0 : index
    %3 = vector.load %arg2[%c0, %c0_1] : memref<8x32xf32, #tpu.memory_space<vmem>>, vector<8x32xf32>
    %c0_2 = arith.constant 0 : index
    %c0_3 = arith.constant 0 : index
    %4 = vector.load %arg3[%c0_2, %c0_3] : memref<8x32xf32, #tpu.memory_space<vmem>>, vector<8x32xf32>
    %5 = arith.subf %3, %4 : vector<8x32xf32>
    %cst = arith.constant 9.99999997E-7 : f32
    %6 = vector.broadcast %cst : f32 to vector<8x32xf32>
    %7 = arith.addf %5, %6 : vector<8x32xf32>
    %8 = arith.mulf %7, %7 : vector<8x32xf32>
    %cst_4 = arith.constant 1.000000e+00 : f32
    %9 = vector.broadcast %cst_4 : f32 to vector<32x1xf32>
    %c0_5 = arith.constant 0 : index
    %c0_6 = arith.constant 0 : index
    %10 = vector.load %arg5[%c0_5, %c0_6] : memref<8x1xf32, #tpu.memory_space<vmem>>, vector<8x1xf32>
    %cst_7 = arith.constant dense<0.000000e+00> : vector<8x1xf32>
    %11 = tpu.matmul %8, %9, %cst_7 {dimension_numbers = #tpu.dot_dimension_numbers<[1], [0], [0], [1], [0, 0, 1, 1], [], []>} : vector<8x32xf32>, vector<32x1xf32>, vector<8x1xf32> -> vector<8x1xf32>
    %12 = arith.addf %10, %11 : vector<8x1xf32>
    %c0_8 = arith.constant 0 : index
    %c0_9 = arith.constant 0 : index
    %13 = vector.load %arg5[%c0_8, %c0_9] : memref<8x1xf32, #tpu.memory_space<vmem>>, vector<8x1xf32>
    tpu.vector_store %arg5[%c0_8, %c0_9], %12 {strides = array<i32>} : memref<8x1xf32, #tpu.memory_space<vmem>>, vector<8x1xf32>,
    %c0_i32_10 = arith.constant 0 : i32
    %14 = arith.cmpi eq, %arg1, %c0_i32_10 : i32
    %15 = arith.extui %14 : i1 to i32
    %c0_i32_11 = arith.constant 0 : i32
    %16 = arith.cmpi ne, %15, %c0_i32_11 : i32
    scf.if %16 {
      %c0_12 = arith.constant 0 : index
      %c0_13 = arith.constant 0 : index
      %17 = vector.load %arg5[%c0_12, %c0_13] : memref<8x1xf32, #tpu.memory_space<vmem>>, vector<8x1xf32>
      %18 = math.sqrt %17 : vector<8x1xf32>
      %c0_14 = arith.constant 0 : index
      %c0_15 = arith.constant 0 : index
      %19 = vector.load %arg4[%c0_14, %c0_15] : memref<8x1xf32, #tpu.memory_space<vmem>>, vector<8x1xf32>
      %cst_16 = arith.constant 2.000000e+00 : f32
      %20 = vector.broadcast %cst_16 : f32 to vector<8x1xf32>
      %21 = arith.subf %20, %18 : vector<8x1xf32>
      %cst_17 = arith.constant 0.000000e+00 : f32
      %22 = vector.broadcast %cst_17 : f32 to vector<8x1xf32>
      %23 = arith.maximumf %21, %22 : vector<8x1xf32>
      %cst_18 = arith.constant 1.000000e+00 : f32
      %24 = vector.broadcast %cst_18 : f32 to vector<8x1xf32>
      %25 = arith.subf %24, %19 : vector<8x1xf32>
      %26 = arith.mulf %25, %17 : vector<8x1xf32>
      %27 = arith.mulf %19, %23 : vector<8x1xf32>
      %28 = arith.mulf %27, %23 : vector<8x1xf32>
      %29 = arith.addf %26, %28 : vector<8x1xf32>
      %c0_19 = arith.constant 0 : index
      %c0_20 = arith.constant 0 : index
      %30 = vector.load %arg5[%c0_19, %c0_20] : memref<8x1xf32, #tpu.memory_space<vmem>>, vector<8x1xf32>
      tpu.vector_store %arg5[%c0_19, %c0_20], %29 {strides = array<i32>} : memref<8x1xf32, #tpu.memory_space<vmem>>, vector<8x1xf32>,
    } else {
    }
    return
  }
  func.func @transform_0(%arg0: i32, %arg1: i32) -> (i32, i32) {
    %c0_i32 = arith.constant 0 : i32
    return %arg0, %arg1 : i32, i32
  }
  func.func @transform_1(%arg0: i32, %arg1: i32) -> (i32, i32) {
    %c0_i32 = arith.constant 0 : i32
    return %arg0, %arg1 : i32, i32
  }
  func.func @transform_2(%arg0: i32, %arg1: i32) -> (i32, i32) {
    %c0_i32 = arith.constant 0 : i32
    %c0_i32_0 = arith.constant 0 : i32
    return %arg0, %c0_i32 : i32, i32
  }
  func.func @transform_3(%arg0: i32, %arg1: i32) -> (i32, i32) {
    %c0_i32 = arith.constant 0 : i32
    %c0_i32_0 = arith.constant 0 : i32
    return %arg0, %c0_i32 : i32, i32
  }
}

</mosaic_0001>

<bundles_post_ra>
// kernel: tpu_custom_call.1
= control target key start
LH: loop header
LB: loop body
LE: loop exit
PB: predicated region body
PF: predicated region fallthrough
CT: control target
= control target key end

     0   :  { %8 = vsyncpa [#allocation3], 0  ;;  %s185_s12 = smov [#allocation2]   ;;  %s236_s0 = inlined_call_operand.vmem [shape: f32[8,32], index: 0, kind: input, shape index: {}]   ;;  %s237_s1 = inlined_call_operand.hbm [shape: f32[8,32], index: 1, kind: input, shape index: {}]   ;;  %s238_s2 = inlined_call_operand.vmem [shape: f32[8,1], index: 2, kind: input, shape index: {}]   ;;  %s239_s3 = inlined_call_operand.vmem [shape: f32[8,1], index: 3, kind: output, shape index: {}]  }
   0x1   :  { %s17_s13 = sshll.u32 %s185_s12, 4  ;;  %s18_s13 = int_to_ptr.vmem [resolvable:$true] %s17_s13 }
   0x2   :  { %s171_s14 = scalar_lea.vmem %s18_s13, 128  ;;  %p176_p1 = scmp.lt.s32.totalorder %s18_s13, %s18_s13 }
   0x3   :  { %p172_p0 = scmp.ne.s32.totalorder %s18_s13, %s171_s14  ;;  %p177_p2 = scmp.lt.s32.totalorder %s171_s14, %s171_s14 }
   0x5   :  { %p178_p3 = por %p177_p2, %p176_p1 }
   0x7   :  { %p179_p4 = pnand %p178_p3, %p172_p0 }
   0x9   :  { %182 = shalt.err (!%p179_p4)
}
   0xa   :  { %20 = dma.hbm_to_vmem [thread:$0]  %s237_s1, 128, %s18_s13, [#allocation3]  }
   0xb   :  { %183 = dma.done.wait [#allocation3], 128  }
   0xc   :  { %184 = vsyncadd [#allocation3], 4294967168  ;;  %v186_v0 = vmov 0.0   ;;  %vm187_vm0 = vmmov 0   ;;  %vm30_vm1 = vcmask 7168   ;;  %v188_v1 = vmov 1.0  }
   0xd   :  { %146 = vmatprep.subr.mxu0 %v186_v0  ;;  %154 = vmatprep.mubr.msk.f32.mxu0 %vm187_vm0, %v186_v0  ;;  %31 = vst.msk [vmem:[%s239_s3] sm:$0xff] %vm30_vm1, %v186_v0  ;;  %v32_v2 = vld [vmem:[%s236_s0] sm:$0xff]  ;;  %vm38_vm2 = vcmask 261120  }
   0xe   :  { %147 = vmatpush3.msra.mxu0 %v188_v1  ;;  %v33_v3 = vld [vmem:[#allocation2] sm:$0xff] }
   0xf   :  { %148 = vmatprep.subr.mxu0 %v186_v0  ;;  %v34_v4 = vsub.f32 %v32_v2, %v33_v3  ;;  %v126_v17 = vld [vmem:[%s238_s2] sm:$0xff] }
  0x10   :  { %149 = vmatpush3.msra.mxu0 %v188_v1  ;;  %v129_v20 = vsub.f32 1.0, %v126_v17 }
  0x11   :  { %150 = vmatprep.subr.mxu0 %v186_v0  ;;  %v35_v5 = vadd.f32 1e-06, %v34_v4 }
  0x12   :  { %151 = vmatpush3.msra.mxu0 %v188_v1 }
  0x13   :  { %152 = vmatprep.subr.mxu0 %v186_v0  ;;  %v36_v6 = vmul.f32 %v35_v5, %v35_v5 }
  0x14   :  { %153 = vmatpush3.msra.mxu0 %v188_v1  ;;  %v37_v7 = vld [vmem:[%s239_s3] sm:$0xff] }
  0x15   :  { %155 = vmatmul.mubr.msk.f32.vlgmr.msra.gmra.mxu0 %vm38_vm2, %v36_v6 }
  0xd5   :  { %v108_v8 = vpop.f32.mrf.mxu0 }
  0xd6   :  { %v112_v9 = vadd.f32 %v108_v8, %v37_v7 }
  0xd7   :  { %v156_v10 = vpop.f32.mrf.mxu0 }
  0xd8   :  { %114 = vst.msk [vmem:[%s239_s3] sm:$0xff] %vm30_vm1, %v112_v9 }
  0xdf   :  { %v118_v11 = vld [vmem:[%s239_s3] sm:$0xff] }
  0xe0   :  { %161 = vrsqrt.f32 %v118_v11  ;;  %vm121_vm3 = vcmp.eq.f32.partialorder %v118_v11, inf  ;;  %v124_v14 = vand.u32 2147483648, %v118_v11  ;;  %vm123_vm4 = vcmp.eq.f32.partialorder %v118_v11, 0.0 }
  0xe1   :  { %v130_v22 = vmul.f32 %v129_v20, %v118_v11 }
  0xed   :  { %v162_v12 = vpop.eup %161 }
  0xee   :  { %v120_v13 = vmul.f32 %v162_v12, %v118_v11 }
  0xf0   :  { %v122_v15 = vsel %vm121_vm3, %v118_v11, %v120_v13 }
  0xf1   :  { %v125_v16 = vsel %vm123_vm4, %v124_v14, %v122_v15 }
  0xf2   :  { %v127_v18 = vsub.f32 2.0, %v125_v16 }
  0xf4   :  { %v128_v19 = vmax.f32 %v127_v18, 0.0 }
  0xf6   :  { %v131_v21 = vmul.f32 %v128_v19, %v126_v17 }
  0xf8   :  { %v132_v23 = vmul.f32 %v131_v21, %v128_v19 }
  0xfa   :  { %v133_v24 = vadd.f32 %v132_v23, %v130_v22 }
  0xfc   :  { %134 = vst.msk [vmem:[%s239_s3] sm:$0xff] %vm30_vm1, %v133_v24 }
  0xfd   :  { %139 = vsyncpa [#allocation3], 1 }

</bundles_post_ra>
